<compile_context>
chip_gen: v7x
topology: tpu7x:2x2x1
jax: 0.10.0
libtpu: 0.0.40
codegen_flags: <defaults>
</compile_context>

<pallas_src>
import numpy as np

import jax
import jax.numpy as jnp
from jax.experimental import pallas as pl
from jax.experimental.pallas import tpu as pltpu

H1 = 32   # encoder/decoder hidden width
H2 = 8    # bottleneck width
LANE = 128


def _round_up(x, m):
    return (x + m - 1) // m * m


def autoencoder_kernel(x_ref,
                       w1_ref, b1_ref,
                       w2_ref, b2_ref,
                       w3_ref, b3_ref,
                       w4_ref, b4_ref,
                       o_ref):
    """One batch tile of the autoencoder forward, fully VMEM-resident.

    MXU matmuls use bf16 operands (weights carry the MXU dtype) with f32
    accumulation; bias add + ReLU run on the VPU in f32.  No inner loops, so
    each bias broadcast materializes exactly once.
    """
    mxu_dtype = w1_ref.dtype

    x = x_ref[...].astype(mxu_dtype)

    # encoder
    h1 = jnp.dot(x, w1_ref[...], preferred_element_type=jnp.float32) + b1_ref[...]
    h1 = jnp.maximum(h1, 0.0).astype(mxu_dtype)
    z = jnp.dot(h1, w2_ref[...], preferred_element_type=jnp.float32) + b2_ref[...]
    z = jnp.maximum(z, 0.0).astype(mxu_dtype)

    # decoder
    h2 = jnp.dot(z, w3_ref[...], preferred_element_type=jnp.float32) + b3_ref[...]
    h2 = jnp.maximum(h2, 0.0).astype(mxu_dtype)
    out = jnp.dot(h2, w4_ref[...], preferred_element_type=jnp.float32) + b4_ref[...]

    o_ref[...] = out.astype(o_ref.dtype)


def autoencoder_forward(x, params, *, mxu_dtype=jnp.bfloat16):
    """x: (B, input_dim) f32 or bf16 (bf16 I/O halves HBM traffic).

    params: dict of f32 weights (in, out) and biases (1, out).
    """
    B, D = x.shape
    io_dtype = x.dtype
    itemsize = jnp.dtype(io_dtype).itemsize
    mxu_itemsize = jnp.dtype(mxu_dtype).itemsize

    # ---- lane-dense feature padding: D -> Dp (multiple of 128) -------------
    Dp = _round_up(D, LANE)
    pad_d = Dp - D

    w1 = params["w1"].astype(mxu_dtype)
    w2 = params["w2"].astype(mxu_dtype)
    w3 = params["w3"].astype(mxu_dtype)
    w4 = params["w4"].astype(mxu_dtype)
    b1, b2, b3, b4 = params["b1"], params["b2"], params["b3"], params["b4"]
    if pad_d:
        # Zero-padded input columns / w1 rows contribute exact zeros; padded
        # w4 / b4 output columns are sliced away below.
        x = jnp.pad(x, ((0, 0), (0, pad_d)))
        w1 = jnp.pad(w1, ((0, pad_d), (0, 0)))
        w4 = jnp.pad(w4, ((0, 0), (0, pad_d)))
        b4 = jnp.pad(b4, ((0, 0), (0, pad_d)))

    # ---- generation-aware VMEM budget --------------------------------------
    try:
        vmem_cap = int(pltpu.get_tpu_info().vmem_capacity_bytes)
    except Exception:
        vmem_cap = 64 * 1024 * 1024  # conservative (v7x-sized) fallback
    # ~25% headroom for compiler scratch; ~48 MiB on v7x (64 MiB physical),
    # up to ~96 MiB on v5e/v6e (128 MiB physical).
    vmem_limit = int(min(max(vmem_cap * 3 // 4, 16 * 1024 * 1024),
                         96 * 1024 * 1024))

    param_arrays = (w1, b1, w2, b2, w3, b3, w4, b4)
    # Resident params counted at 2x: default pipelining double-buffers them.
    param_bytes = 2 * sum(int(np.prod(a.shape)) * jnp.dtype(a.dtype).itemsize
                          for a in param_arrays)

    # Per-row VMEM footprint of one grid step (includes the full-width f32
    # pre-cast output accumulator and the MXU-dtype cast of the x tile).
    per_row = (2 * Dp * itemsize            # x tile, double-buffered
               + 2 * Dp * itemsize          # out tile, double-buffered
               + Dp * 4                     # f32 output accumulator (pre-cast)
               + Dp * mxu_itemsize          # x cast to MXU dtype
               + 4 * LANE * (4 + mxu_itemsize))  # lane-padded hidden acts
    budget = vmem_limit - param_bytes - (4 << 20)     # fixed extra headroom
    tb_budget = (budget // (per_row * 3 // 2)) // 8 * 8  # 1.5x slack
    tb_budget = int(max(8, min(tb_budget, 8192)))

    # Two-TC split on v7x: for small B cap the tile at ceil(B/2) (mult of 8)
    # so the grid has >= 2 programs; no-op on single-TC v5e/v6e.
    tb = min(tb_budget, max(8, _round_up(pl.cdiv(B, 2), 8)))

    # Pad the batch to a multiple of tb (zero rows; rows are independent and
    # the padded rows are sliced away), avoiding edge-block corner cases.
    Bp = _round_up(B, tb)
    if Bp != B:
        x = jnp.pad(x, ((0, Bp - B), (0, 0)))
    grid = (Bp // tb,)

    def tiled(shape):
        # x / out: tiled along the batch grid axis, lane-dense last dim.
        return pl.BlockSpec(shape, lambda i: (i, 0))

    def resident(a):
        # Constant block index -> stays VMEM-resident across grid steps.
        return pl.BlockSpec(a.shape, lambda i: (0, 0))

    in_specs = [
        tiled((tb, Dp)),
        resident(w1), resident(b1),
        resident(w2), resident(b2),
        resident(w3), resident(b3),
        resident(w4), resident(b4),
    ]
    out_spec = tiled((tb, Dp))

    flops = int(2 * Bp * (Dp * H1 + H1 * H2 + H2 * H1 + H1 * Dp))
    bytes_accessed = int(2 * Bp * Dp * itemsize + param_bytes // 2)

    out = pl.pallas_call(
        autoencoder_kernel,
        out_shape=jax.ShapeDtypeStruct((Bp, Dp), io_dtype),
        grid=grid,
        in_specs=in_specs,
        out_specs=out_spec,
        compiler_params=pltpu.CompilerParams(
            dimension_semantics=("parallel",),   # batch axis -> megacore split
            vmem_limit_bytes=vmem_limit,
        ),
        cost_estimate=pl.CostEstimate(
            flops=flops, transcendentals=0, bytes_accessed=bytes_accessed),
    )(x, w1, b1, w2, b2, w3, b3, w4, b4)

    return out[:B, :D]


def init_params(key, input_dim):
    """Deterministic synthetic init matching the PyTorch module's shapes.

    PyTorch Linear(in, out) stores weight as (out, in); here we store the
    transpose (in, out) so the kernel computes y = x @ W + b directly.
    """
    ks = jax.random.split(key, 8)

    def linear(kw, kb, fan_in, fan_out):
        bound = 1.0 / np.sqrt(fan_in)
        w = jax.random.uniform(kw, (fan_in, fan_out), jnp.float32, -bound, bound)
        b = jax.random.uniform(kb, (1, fan_out), jnp.float32, -bound, bound)
        return w, b

    w1, b1 = linear(ks[0], ks[1], input_dim, H1)
    w2, b2 = linear(ks[2], ks[3], H1, H2)
    w3, b3 = linear(ks[4], ks[5], H2, H1)
    w4, b4 = linear(ks[6], ks[7], H1, input_dim)
    return dict(w1=w1, b1=b1, w2=w2, b2=b2, w3=w3, b3=b3, w4=w4, b4=b4)


def reference_forward(x, p, *, mxu_dtype=jnp.bfloat16):
    """Pure-JAX reference mirroring the kernel's dtype handling."""
    io_dtype = x.dtype

    def layer(a, w, b, relu):
        y = jnp.dot(a.astype(mxu_dtype), w.astype(mxu_dtype),
                    preferred_element_type=jnp.float32) + b
        return jnp.maximum(y, 0.0) if relu else y

    h1 = layer(x, p["w1"], p["b1"], True)
    z = layer(h1, p["w2"], p["b2"], True)
    h2 = layer(z, p["w3"], p["b3"], True)
    out = layer(h2, p["w4"], p["b4"], False)
    return out.astype(io_dtype)


if __name__ == "__main__":
    key = jax.random.PRNGKey(0)
    k_x, k_p = jax.random.split(key)

    # Small deterministic example consistent with the module: (batch=8, D=16).
    B, input_dim = 8, 16
    x = jax.random.normal(k_x, (B, input_dim), jnp.float32)
    params = init_params(k_p, input_dim)

    # f32 I/O path (bf16 MXU operands, f32 accumulation) vs. mirrored reference.
    out = jax.block_until_ready(autoencoder_forward(x, params))
    ref = reference_forward(x, params, mxu_dtype=jnp.bfloat16)
    np.testing.assert_allclose(np.asarray(out), np.asarray(ref),
                               rtol=1e-5, atol=1e-5)

    # Sanity vs. a pure-f32 reference (PyTorch-equivalent math), bf16 tolerance.
    ref_f32 = reference_forward(x, params, mxu_dtype=jnp.float32)
    np.testing.assert_allclose(np.asarray(out), np.asarray(ref_f32),
                               rtol=5e-2, atol=5e-2)

    # Non-128-multiple D and non-tile-multiple B exercise the padding path
    # and the >=2-program grid split.
    B2, D2 = 20, 40
    x2 = jax.random.normal(k_x, (B2, D2), jnp.float32)
    params2 = init_params(k_p, D2)
    out2 = jax.block_until_ready(autoencoder_forward(x2, params2))
    ref2 = reference_forward(x2, params2, mxu_dtype=jnp.bfloat16)
    np.testing.assert_allclose(np.asarray(out2), np.asarray(ref2),
                               rtol=1e-5, atol=1e-5)

    # bf16 I/O path (halves HBM traffic for this bandwidth-bound kernel).
    x_bf16 = x.astype(jnp.bfloat16)
    out_bf16 = jax.block_until_ready(autoencoder_forward(x_bf16, params))
    ref_bf16 = reference_forward(x_bf16, params, mxu_dtype=jnp.bfloat16)
    np.testing.assert_allclose(np.asarray(out_bf16, dtype=np.float32),
                               np.asarray(ref_bf16, dtype=np.float32),
                               rtol=5e-2, atol=5e-2)

    print("KERNEL_OK")
</pallas_src>

<mosaic_0001>
module attributes {stable_mosaic.version = 11 : i64} {
  func.func @autoencoder_kernel(%arg0: i32, %arg1: memref<8x128xf32, #tpu.memory_space<vmem>>, %arg2: memref<128x32xbf16, #tpu.memory_space<vmem>>, %arg3: memref<1x32xf32, #tpu.memory_space<vmem>>, %arg4: memref<32x8xbf16, #tpu.memory_space<vmem>>, %arg5: memref<1x8xf32, #tpu.memory_space<vmem>>, %arg6: memref<8x32xbf16, #tpu.memory_space<vmem>>, %arg7: memref<1x32xf32, #tpu.memory_space<vmem>>, %arg8: memref<32x128xbf16, #tpu.memory_space<vmem>>, %arg9: memref<1x128xf32, #tpu.memory_space<vmem>>, %arg10: memref<8x128xf32, #tpu.memory_space<vmem>>) attributes {dimension_semantics = [#tpu.dimension_semantics<parallel>], iteration_bounds = array<i64: 1>, scalar_prefetch = 0 : i64, scratch_operands = 0 : i64, tpu.core_type = #tpu.core_type<tc>, window_params = [{transform_indices = @transform_0, window_bounds = array<i64: 8, 128>}, {pipeline_mode = #tpu.pipeline_mode<synchronous>, transform_indices = @transform_1, window_bounds = array<i64: 128, 32>}, {pipeline_mode = #tpu.pipeline_mode<synchronous>, transform_indices = @transform_2, window_bounds = array<i64: 1, 32>}, {pipeline_mode = #tpu.pipeline_mode<synchronous>, transform_indices = @transform_3, window_bounds = array<i64: 32, 8>}, {pipeline_mode = #tpu.pipeline_mode<synchronous>, transform_indices = @transform_4, window_bounds = array<i64: 1, 8>}, {pipeline_mode = #tpu.pipeline_mode<synchronous>, transform_indices = @transform_5, window_bounds = array<i64: 8, 32>}, {pipeline_mode = #tpu.pipeline_mode<synchronous>, transform_indices = @transform_6, window_bounds = array<i64: 1, 32>}, {pipeline_mode = #tpu.pipeline_mode<synchronous>, transform_indices = @transform_7, window_bounds = array<i64: 32, 128>}, {pipeline_mode = #tpu.pipeline_mode<synchronous>, transform_indices = @transform_8, window_bounds = array<i64: 1, 128>}, {transform_indices = @transform_9, window_bounds = array<i64: 8, 128>}]} {
    %c0 = arith.constant 0 : index
    %c0_0 = arith.constant 0 : index
    %0 = vector.load %arg1[%c0, %c0_0] : memref<8x128xf32, #tpu.memory_space<vmem>>, vector<8x128xf32>
    %1 = arith.truncf %0 : vector<8x128xf32> to vector<8x128xbf16>
    %c0_1 = arith.constant 0 : index
    %c0_2 = arith.constant 0 : index
    %2 = vector.load %arg2[%c0_1, %c0_2] : memref<128x32xbf16, #tpu.memory_space<vmem>>, vector<128x32xbf16>
    %cst = arith.constant dense<0.000000e+00> : vector<8x32xf32>
    %3 = tpu.matmul %1, %2, %cst {dimension_numbers = #tpu.dot_dimension_numbers<[1], [0], [0], [1], [0, 0, 1, 1], [], []>} : vector<8x128xbf16>, vector<128x32xbf16>, vector<8x32xf32> -> vector<8x32xf32>
    %c0_3 = arith.constant 0 : index
    %c0_4 = arith.constant 0 : index
    %4 = vector.load %arg3[%c0_3, %c0_4] : memref<1x32xf32, #tpu.memory_space<vmem>>, vector<1x32xf32>
    %5 = vector.broadcast %4 : vector<1x32xf32> to vector<8x32xf32>
    %6 = arith.addf %3, %5 : vector<8x32xf32>
    %cst_5 = arith.constant 0.000000e+00 : f32
    %7 = vector.broadcast %cst_5 : f32 to vector<8x32xf32>
    %8 = arith.maximumf %6, %7 : vector<8x32xf32>
    %9 = arith.truncf %8 : vector<8x32xf32> to vector<8x32xbf16>
    %c0_6 = arith.constant 0 : index
    %c0_7 = arith.constant 0 : index
    %10 = vector.load %arg4[%c0_6, %c0_7] : memref<32x8xbf16, #tpu.memory_space<vmem>>, vector<32x8xbf16>
    %cst_8 = arith.constant dense<0.000000e+00> : vector<8x8xf32>
    %11 = tpu.matmul %9, %10, %cst_8 {dimension_numbers = #tpu.dot_dimension_numbers<[1], [0], [0], [1], [0, 0, 1, 1], [], []>} : vector<8x32xbf16>, vector<32x8xbf16>, vector<8x8xf32> -> vector<8x8xf32>
    %c0_9 = arith.constant 0 : index
    %c0_10 = arith.constant 0 : index
    %12 = vector.load %arg5[%c0_9, %c0_10] : memref<1x8xf32, #tpu.memory_space<vmem>>, vector<1x8xf32>
    %13 = vector.broadcast %12 : vector<1x8xf32> to vector<8x8xf32>
    %14 = arith.addf %11, %13 : vector<8x8xf32>
    %cst_11 = arith.constant 0.000000e+00 : f32
    %15 = vector.broadcast %cst_11 : f32 to vector<8x8xf32>
    %16 = arith.maximumf %14, %15 : vector<8x8xf32>
    %17 = arith.truncf %16 : vector<8x8xf32> to vector<8x8xbf16>
    %c0_12 = arith.constant 0 : index
    %c0_13 = arith.constant 0 : index
    %18 = vector.load %arg6[%c0_12, %c0_13] : memref<8x32xbf16, #tpu.memory_space<vmem>>, vector<8x32xbf16>
    %cst_14 = arith.constant dense<0.000000e+00> : vector<8x32xf32>
    %19 = tpu.matmul %17, %18, %cst_14 {dimension_numbers = #tpu.dot_dimension_numbers<[1], [0], [0], [1], [0, 0, 1, 1], [], []>} : vector<8x8xbf16>, vector<8x32xbf16>, vector<8x32xf32> -> vector<8x32xf32>
    %c0_15 = arith.constant 0 : index
    %c0_16 = arith.constant 0 : index
    %20 = vector.load %arg7[%c0_15, %c0_16] : memref<1x32xf32, #tpu.memory_space<vmem>>, vector<1x32xf32>
    %21 = vector.broadcast %20 : vector<1x32xf32> to vector<8x32xf32>
    %22 = arith.addf %19, %21 : vector<8x32xf32>
    %cst_17 = arith.constant 0.000000e+00 : f32
    %23 = vector.broadcast %cst_17 : f32 to vector<8x32xf32>
    %24 = arith.maximumf %22, %23 : vector<8x32xf32>
    %25 = arith.truncf %24 : vector<8x32xf32> to vector<8x32xbf16>
    %c0_18 = arith.constant 0 : index
    %c0_19 = arith.constant 0 : index
    %26 = vector.load %arg8[%c0_18, %c0_19] : memref<32x128xbf16, #tpu.memory_space<vmem>>, vector<32x128xbf16>
    %cst_20 = arith.constant dense<0.000000e+00> : vector<8x128xf32>
    %27 = tpu.matmul %25, %26, %cst_20 {dimension_numbers = #tpu.dot_dimension_numbers<[1], [0], [0], [1], [0, 0, 1, 1], [], []>} : vector<8x32xbf16>, vector<32x128xbf16>, vector<8x128xf32> -> vector<8x128xf32>
    %c0_21 = arith.constant 0 : index
    %c0_22 = arith.constant 0 : index
    %28 = vector.load %arg9[%c0_21, %c0_22] : memref<1x128xf32, #tpu.memory_space<vmem>>, vector<1x128xf32>
    %29 = vector.broadcast %28 : vector<1x128xf32> to vector<8x128xf32>
    %30 = arith.addf %27, %29 : vector<8x128xf32>
    %c0_23 = arith.constant 0 : index
    %c0_24 = arith.constant 0 : index
    %31 = vector.load %arg10[%c0_23, %c0_24] : memref<8x128xf32, #tpu.memory_space<vmem>>, vector<8x128xf32>
    tpu.vector_store %arg10[%c0_23, %c0_24], %30 {strides = array<i32>} : memref<8x128xf32, #tpu.memory_space<vmem>>, vector<8x128xf32>,
    return
  }
  func.func @transform_0(%arg0: i32) -> (i32, i32) {
    %c0_i32 = arith.constant 0 : i32
    %c0_i32_0 = arith.constant 0 : i32
    return %arg0, %c0_i32 : i32, i32
  }
  func.func @transform_1(%arg0: i32) -> (i32, i32) {
    %c0_i32 = arith.constant 0 : i32
    %c0_i32_0 = arith.constant 0 : i32
    %c0_i32_1 = arith.constant 0 : i32
    return %c0_i32, %c0_i32_0 : i32, i32
  }
  func.func @transform_2(%arg0: i32) -> (i32, i32) {
    %c0_i32 = arith.constant 0 : i32
    %c0_i32_0 = arith.constant 0 : i32
    %c0_i32_1 = arith.constant 0 : i32
    return %c0_i32, %c0_i32_0 : i32, i32
  }
  func.func @transform_3(%arg0: i32) -> (i32, i32) {
    %c0_i32 = arith.constant 0 : i32
    %c0_i32_0 = arith.constant 0 : i32
    %c0_i32_1 = arith.constant 0 : i32
    return %c0_i32, %c0_i32_0 : i32, i32
  }
  func.func @transform_4(%arg0: i32) -> (i32, i32) {
    %c0_i32 = arith.constant 0 : i32
    %c0_i32_0 = arith.constant 0 : i32
    %c0_i32_1 = arith.constant 0 : i32
    return %c0_i32, %c0_i32_0 : i32, i32
  }
  func.func @transform_5(%arg0: i32) -> (i32, i32) {
    %c0_i32 = arith.constant 0 : i32
    %c0_i32_0 = arith.constant 0 : i32
    %c0_i32_1 = arith.constant 0 : i32
    return %c0_i32, %c0_i32_0 : i32, i32
  }
  func.func @transform_6(%arg0: i32) -> (i32, i32) {
    %c0_i32 = arith.constant 0 : i32
    %c0_i32_0 = arith.constant 0 : i32
    %c0_i32_1 = arith.constant 0 : i32
    return %c0_i32, %c0_i32_0 : i32, i32
  }
  func.func @transform_7(%arg0: i32) -> (i32, i32) {
    %c0_i32 = arith.constant 0 : i32
    %c0_i32_0 = arith.constant 0 : i32
    %c0_i32_1 = arith.constant 0 : i32
    return %c0_i32, %c0_i32_0 : i32, i32
  }
  func.func @transform_8(%arg0: i32) -> (i32, i32) {
    %c0_i32 = arith.constant 0 : i32
    %c0_i32_0 = arith.constant 0 : i32
    %c0_i32_1 = arith.constant 0 : i32
    return %c0_i32, %c0_i32_0 : i32, i32
  }
  func.func @transform_9(%arg0: i32) -> (i32, i32) {
    %c0_i32 = arith.constant 0 : i32
    %c0_i32_0 = arith.constant 0 : i32
    return %arg0, %c0_i32 : i32, i32
  }
}

</mosaic_0001>

<bundles_post_ra>
// kernel: tpu_custom_call.1
= control target key start
LH: loop header
LB: loop body
LE: loop exit
PB: predicated region body
PF: predicated region fallthrough
CT: control target
= control target key end

     0   :  { %v474_v1 = vmov 0.0   ;;  %vm475_vm0 = vmmov 0   ;;  %s616_s0 = inlined_call_operand.vmem [shape: f32[8,128], index: 0, kind: input, shape index: {}]   ;;  %s617_s1 = inlined_call_operand.vmem [shape: bf16[128,32], index: 1, kind: input, shape index: {}]   ;;  %s618_s2 = inlined_call_operand.vmem [shape: f32[1,32], index: 2, kind: input, shape index: {}]   ;;  %s619_s3 = inlined_call_operand.vmem [shape: bf16[32,8], index: 3, kind: input, shape index: {}]   ;;  %s620_s4 = inlined_call_operand.vmem [shape: f32[1,8], index: 4, kind: input, shape index: {}]   ;;  %s621_s5 = inlined_call_operand.vmem [shape: bf16[8,32], index: 5, kind: input, shape index: {}]   ;;  %s622_s6 = inlined_call_operand.vmem [shape: f32[1,32], index: 6, kind: input, shape index: {}]   ;;  %s623_s7 = inlined_call_operand.vmem [shape: bf16[32,128], index: 7, kind: input, shape index: {}]   ;;  %s624_s8 = inlined_call_operand.vmem [shape: f32[1,128], index: 8, kind: input, shape index: {}]   ;;  %s625_s9 = inlined_call_operand.hbm [shape: f32[8,128], index: 9, kind: output, shape index: {}]  }
   0x1   :  { %v438_v0 = vld [vmem:[%s617_s1] sm:$0xff]   ;;  %393 = vmatprep.subr.bf16.mxu0 %v474_v1  ;;  %413 = vmatprep.subr.bf16.mxu1 %v474_v1  ;;  %v439_v2 = vld [vmem:[%s617_s1 + $0x8] sm:$0xff]   ;;  %v440_v3 = vld [vmem:[%s617_s1 + $0x10] sm:$0xff]  }
   0x2   :  { %394 = vmatpush3.bf16.msra.mxu0 %v438_v0  ;;  %409 = vmatprep.mubr.msk.bf16.mxu0 %vm475_vm0, %v474_v1  ;;  %v441_v4 = vld [vmem:[%s617_s1 + $0x18] sm:$0xff]  }
   0x3   :  { %395 = vmatprep.subr.bf16.mxu0 %v474_v1  ;;  %417 = vmatprep.mubr.msk.bf16.mxu1 %vm475_vm0, %v474_v1 }
   0x6   :  { %396 = vmatpush3.bf16.msra.mxu0 %v439_v2 }
   0x7   :  { %397 = vmatprep.subr.bf16.mxu0 %v474_v1 }
   0xa   :  { %398 = vmatpush3.bf16.msra.mxu0 %v440_v3 }
   0xb   :  { %399 = vmatprep.subr.bf16.mxu0 %v474_v1 }
   0xc   :  { %14 = vsyncpa [#allocation3], 0  ;;  %v442_v5 = vld [vmem:[%s617_s1 + $0x20] sm:$0xff]   ;;  %v443_v6 = vld [vmem:[%s617_s1 + $0x28] sm:$0xff]   ;;  %vm230_vm1 = vcmask 1043456   ;;  %vm172_vm2 = vcmask 261120  }
   0xd   :  { %v444_v7 = vld [vmem:[%s617_s1 + $0x30] sm:$0xff]   ;;  %v445_v8 = vld [vmem:[%s617_s1 + $0x38] sm:$0xff]   ;;  %v34_v9 = vld [vmem:[%s616_s0] sm:$0xff]  ;;  %vm226_vm3 = vcmask 64512   ;;  %s476_s18 = smov [#allocation2]  }
   0xe   :  { %400 = vmatpush3.bf16.msra.mxu0 %v441_v4  ;;  %v35_v10 = vpack.c.bf16 %v34_v9, %v34_v9  ;;  %v446_v11 = vld [vmem:[%s619_s3] sm:$0xff]   ;;  %v447_v12 = vld [vmem:[%s619_s3 + $0x8] sm:$0xff]  }
   0xf   :  { %401 = vmatprep.subr.bf16.mxu0 %v474_v1  ;;  %414 = vmatpush3.bf16.msra.mxu1 %v446_v11  ;;  %v357_v13 = vld [vmem:[%s618_s2] ss:$0 sm:$0xff]  ;;  %v449_v32 = vld [vmem:[%s623_s7 + $0x8] sm:$0xff]  }
  0x10   :  { %415 = vmatprep.subr.bf16.mxu1 %v474_v1  ;;  %v218_v18 = vld [vmem:[%s621_s5] sm:$0xf] }
  0x11   :  { %v232_v22 = vsel %vm230_vm1, %v218_v18, 0  ;;  %v366_v23 = vld [vmem:[%s620_s4] ss:$0 sm:$0xff] }
  0x12   :  { %402 = vmatpush3.bf16.msra.mxu0 %v442_v5  ;;  %v448_v30 = vld [vmem:[%s623_s7] sm:$0xff]   ;;  %s349_s7 = sshll.u32 %s476_s18, 4  ;;  %s350_s7 = int_to_ptr.vmem [resolvable:$true] %s349_s7 }
  0x13   :  { %403 = vmatprep.subr.bf16.mxu0 %v474_v1  ;;  %416 = vmatpush3.bf16.msra.mxu1 %v447_v12  ;;  %v370_v33 = vld [vmem:[%s622_s6] ss:$0 sm:$0xff]  ;;  %s450_s6 = scalar_lea.vmem %s350_s7, 128  ;;  %p455_p1 = scmp.lt.s32.totalorder %s350_s7, %s350_s7 }
  0x14   :  { %421 = vmatprep.subr.bf16.mxu1 %v474_v1  ;;  %v372_v41 = vld [vmem:[%s624_s8] ss:$0 sm:$0xff]  ;;  %p451_p0 = scmp.ne.s32.totalorder %s350_s7, %s450_s6  ;;  %p456_p2 = scmp.lt.s32.totalorder %s450_s6, %s450_s6 }
  0x16   :  { %404 = vmatpush3.bf16.msra.mxu0 %v443_v6  ;;  %p457_p3 = por %p456_p2, %p455_p1 }
  0x17   :  { %405 = vmatprep.subr.bf16.mxu0 %v474_v1 }
  0x18   :  { %p458_p4 = pnand %p457_p3, %p451_p0 }
  0x1a   :  { %406 = vmatpush3.bf16.msra.mxu0 %v444_v7 }
  0x1b   :  { %407 = vmatprep.subr.bf16.mxu0 %v474_v1 }
  0x1e   :  { %408 = vmatpush3.bf16.msra.mxu0 %v445_v8 }
  0x21   :  { %410 = vmatmul.mubr.bf16.vlgmr.msra.gmra.mrb[0].mxu0 %v35_v10 }
  0xf4   :  { %v141_v14 = vpop.f32.mrb[0].mxu0 }
  0xf5   :  { %v142_v15 = vadd.f32 %v357_v13, %v141_v14  ;;  %v411_v16 = vpop.f32.mrb[1].mxu0 }
  0xf6   :  { %v144_v17 = vpop.f32.mrb[2].mxu0 }
  0xf7   :  { %v147_v19 = vmax.f32 %v142_v15, 0.0  ;;  %v412_v20 = vpop.f32.mrb[3].mxu0 }
  0xf9   :  { %v148_v21 = vpack.c.bf16 %v147_v19, %v147_v19 }
  0xfb   :  { %418 = vmatmul.mubr.msk.bf16.vlgmr.msra.gmra.mrb[0].mxu1 %vm172_vm2, %v148_v21 }
  0xfc   :  { %422 = vmatpush3.bf16.msra.mxu1 %v232_v22  ;;  %423 = vmatprep.mubr.msk.bf16.mxu1 %vm475_vm0, %v474_v1 }
  0xfd   :  { %427 = vmatprep.subr.bf16.mxu1 %v474_v1 }
 0x1ce   :  { %v210_v24 = vpop.f32.mrb[0].mxu1 }
 0x1cf   :  { %v211_v25 = vadd.f32 %v366_v23, %v210_v24  ;;  %v419_v26 = vpop.f32.mrb[1].mxu1 }
 0x1d0   :  { %v213_v27 = vpop.f32.mrb[2].mxu1 }
 0x1d1   :  { %v216_v28 = vmax.f32 %v211_v25, 0.0  ;;  %v420_v29 = vpop.f32.mrb[3].mxu1 }
 0x1d3   :  { %v217_v31 = vpack.c.bf16 %v216_v28, %v216_v28 }
 0x1d5   :  { %424 = vmatmul.mubr.msk.bf16.vlgmr.msra.gmra.mrb[4].mxu1 %vm226_vm3, %v217_v31 }
 0x1d6   :  { %428 = vmatpush3.bf16.msra.mxu1 %v448_v30  ;;  %431 = vmatprep.mubr.msk.bf16.mxu1 %vm475_vm0, %v474_v1 }
 0x1d7   :  { %429 = vmatprep.subr.bf16.mxu1 %v474_v1 }
 0x1da   :  { %430 = vmatpush3.bf16.msra.mxu1 %v449_v32 }
 0x2a8   :  { %v268_v34 = vpop.f32.mrb[4].mxu1 }
 0x2a9   :  { %v269_v35 = vadd.f32 %v370_v33, %v268_v34  ;;  %v425_v36 = vpop.f32.mrb[5].mxu1 }
 0x2aa   :  { %v271_v37 = vpop.f32.mrb[6].mxu1 }
 0x2ab   :  { %v274_v38 = vmax.f32 %v269_v35, 0.0  ;;  %v426_v39 = vpop.f32.mrb[7].mxu1 }
 0x2ad   :  { %v275_v40 = vpack.c.bf16 %v274_v38, %v274_v38 }
 0x2af   :  { %432 = vmatmul.mubr.msk.bf16.vlgmr.msra.gmra.mrb[8].mxu1 %vm172_vm2, %v275_v40 }
 0x382   :  { %v336_v42 = vpop.f32.mrb[8].mxu1 }
 0x383   :  { %v337_v43 = vadd.f32 %v372_v41, %v336_v42  ;;  %v433_v44 = vpop.f32.mrb[9].mxu1 }
 0x384   :  { %v339_v45 = vpop.f32.mrb[10].mxu1 }
 0x385   :  { %342 = vst [vmem:[#allocation2] sm:$0xff] %v337_v43  ;;  %v434_v46 = vpop.f32.mrb[11].mxu1 }
 0x386   :  { %461 = shalt.err (!%p458_p4)
}
 0x387   :  { %s462_s8 = scalar_lea.hbm %s625_s9, 128 }
 0x388   :  { %p463_p5 = scmp.ne.s32.totalorder %s625_s9, %s462_s8  ;;  %p466_p6 = scmp.lt.u32.totalorder %s462_s8, %s625_s9 }
 0x38a   :  { %p468_p7 = pnand %p466_p6, %p463_p5 }
 0x38c   :  { %471 = shalt.err (!%p468_p7)
}
 0x38d   :  { %352 = dma.vmem_to_hbm [thread:$0]  %s350_s7, 128, %s625_s9, [#allocation3]  }
 0x38e   :  { %472 = dma.done.wait [#allocation3], 128  }
 0x38f   :  { %473 = vsyncadd [#allocation3], 4294967168 }
 0x390   :  { %356 = vsyncpa [#allocation3], 1 }

</bundles_post_ra>
